<compile_context>
chip_gen: v6e
topology: v6e:2x2x1
jax: 0.10.0
libtpu: 0.0.40
codegen_flags: <defaults>
</compile_context>

<pallas_src>
import jax
import jax.numpy as jnp
from jax.experimental import pallas as pl
from jax.experimental.pallas import tpu as pltpu


def _round_up(x, m):
    return (x + m - 1) // m * m


def _vmem_capacity_bytes():
    """Physical VMEM per core (128 MiB on v5e/v6e, 64 MiB on v7x)."""
    try:
        return int(pltpu.get_tpu_info().vmem_capacity_bytes)
    except Exception:
        return 64 << 20  # conservative default


def _vmem_estimate(tm, th, e_pad, bpe, wbuf):
    """VMEM footprint (bytes) of one pipeline configuration."""
    return (
        2 * tm * e_pad * bpe            # x tile, double-buffered
        + 2 * wbuf * e_pad * th * bpe   # w1 + w2 tiles, wbuf-deep
        + wbuf * th * e_pad * bpe       # w3 tile, wbuf-deep
        + 2 * tm * e_pad * bpe          # output tile, double-buffered
        + tm * e_pad * 4                # f32 accumulator scratch
        + 2 * tm * th * 4               # f32 up-projection / gate intermediates
    )


def _select_tiles(T, e_pad, h_pad, bpe, vmem_cap):
    """Pick (tm, th) so the double-buffered pipeline fits VMEM with headroom.

    Weight-streaming arithmetic intensity is ~2*tm/bpe FLOP/byte, so the token
    tile is the primary lever (prefer tall); the hidden tile is secondary.
    v7x's 64 MiB VMEM gets a narrower hidden tile, v5e/v6e's 128 MiB a wider one.
    """
    sub = 16 if bpe == 2 else 8
    budget = max(vmem_cap - (12 << 20), 16 << 20)

    big_vmem = vmem_cap >= (96 << 20)
    tm_cap = 1024 if big_vmem else 512
    th_cap = 512 if big_vmem else 256

    th_cands = [c for c in range(min(h_pad, th_cap), 127, -128) if h_pad % c == 0]
    if not th_cands:
        th_cands = [128]

    tm_full = _round_up(T, sub)
    tm_cands = []
    t = min(tm_cap, tm_full)
    while t >= sub:
        tm_cands.append(t)
        t = (t // 2) // sub * sub
    if not tm_cands:
        tm_cands = [sub]

    for tm in tm_cands:
        for th in th_cands:
            if _vmem_estimate(tm, th, e_pad, bpe, 2) <= budget:
                return tm, th, budget
    return tm_cands[-1], th_cands[-1], budget


def _ffn_kernel(x_ref, w1_ref, w2_ref, w3_ref, o_ref, acc_ref):
    # x_ref:   (tm, E)      activations (block constant across the h axis)
    # w1_ref:  (E, th)      fc1 tile for hidden slice h
    # w2_ref:  (E, th)      fc2 tile for hidden slice h
    # w3_ref:  (th, E)      fc3 (down-projection) tile for hidden slice h
    # o_ref:   (tm, E)      output tile (written once, at the last h step)
    # acc_ref: (tm, E) f32  accumulator scratch, persists across h steps
    h = pl.program_id(1)

    @pl.when(h == 0)
    def _():
        acc_ref[...] = jnp.zeros_like(acc_ref)

    x = x_ref[...]
    # Up-projections on the MXU with f32 accumulation (bf16 inputs are native).
    h1 = jnp.dot(x, w1_ref[...], preferred_element_type=jnp.float32)
    h2 = jnp.dot(x, w2_ref[...], preferred_element_type=jnp.float32)
    # SwiGLU gate in f32 (sigmoid runs on the EUP slot).
    gated = (h1 * jax.nn.sigmoid(h1)) * h2
    # Partial down-projection for this hidden slice, accumulated in f32.
    acc_ref[...] += jnp.dot(gated.astype(w3_ref.dtype), w3_ref[...],
                            preferred_element_type=jnp.float32)

    @pl.when(h == pl.num_programs(1) - 1)
    def _():
        o_ref[...] = acc_ref[...].astype(o_ref.dtype)


def feed_forward(x, w1, w2, w3, *, tm=None, th=None):
    """SwiGLU FFN: fc3(silu(fc1(x)) * fc2(x)).

    x:  (B, S, E)
    w1: (E, H)  fc1 weight pre-transposed (nn.Linear stores (H, E))
    w2: (E, H)  fc2 weight pre-transposed
    w3: (H, E)  fc3 weight pre-transposed

    Weights that are already 128-aligned (typical for real models) are passed
    straight through: no per-call padding or relayout, no extra HBM copies.
    For best MXU throughput keep x and the weights in bfloat16.
    """
    B, S, E = x.shape
    H = w1.shape[1]
    assert w1.shape == (E, H) and w2.shape == (E, H) and w3.shape == (H, E)
    dtype = x.dtype
    bpe = jnp.dtype(dtype).itemsize
    sub = 16 if bpe == 2 else 8
    T = B * S

    E_pad = _round_up(E, 128)
    H_pad = _round_up(H, 128)

    vmem_cap = _vmem_capacity_bytes()
    tm_auto, th_auto, budget = _select_tiles(T, E_pad, H_pad, bpe, vmem_cap)
    if tm is None:
        tm = tm_auto
    tm = max(sub, (min(tm, _round_up(T, sub)) // sub) * sub)
    if th is None:
        th = th_auto
    assert th % 128 == 0 and H_pad % th == 0

    T_pad = _round_up(T, tm)
    n_t = T_pad // tm
    n_h = H_pad // th

    # Zero-padding is exact (padded rows/cols contribute nothing and are sliced
    # off), and is skipped entirely when dims are already aligned.
    x2d = x.reshape(T, E)
    if T_pad != T or E_pad != E:
        x2d = jnp.pad(x2d, ((0, T_pad - T), (0, E_pad - E)))
    if E_pad != E or H_pad != H:
        w1p = jnp.pad(w1, ((0, E_pad - E), (0, H_pad - H)))
        w2p = jnp.pad(w2, ((0, E_pad - E), (0, H_pad - H)))
        w3p = jnp.pad(w3, ((0, H_pad - H), (0, E_pad - E)))
    else:
        w1p, w2p, w3p = w1, w2, w3

    est2 = _vmem_estimate(tm, th, E_pad, bpe, 2)
    est3 = _vmem_estimate(tm, th, E_pad, bpe, 3)
    # Deeper buffering on the weight streams hides DMA bubbles at hidden-tile
    # boundaries when VMEM allows (v5e/v6e; on v7x only once th is small enough).
    deep_weights = est3 <= budget and (n_t * n_h) >= 3
    est = est3 if deep_weights else est2
    vmem_limit = int(min(vmem_cap - (8 << 20), max(est + (16 << 20), 32 << 20)))

    cost = pl.CostEstimate(
        flops=6 * T_pad * E_pad * H_pad,       # 2*T*E*(2H) up + 2*T*H*E down
        transcendentals=T_pad * H_pad,         # sigmoid
        # Weights are re-streamed once per token tile; activations read+written.
        bytes_accessed=(2 * T_pad * E_pad + n_t * 3 * E_pad * H_pad) * bpe,
    )

    def _weight_spec(shape, index_map, nbuf):
        if nbuf > 2:
            try:
                return pl.BlockSpec(shape, index_map, pipeline_mode=pl.Buffered(nbuf))
            except TypeError:
                pass
        return pl.BlockSpec(shape, index_map)

    def _run(nbuf):
        return pl.pallas_call(
            _ffn_kernel,
            out_shape=jax.ShapeDtypeStruct((T_pad, E_pad), dtype),
            grid_spec=pltpu.PrefetchScalarGridSpec(
                num_scalar_prefetch=0,
                grid=(n_t, n_h),
                in_specs=[
                    pl.BlockSpec((tm, E_pad), lambda i, h: (i, 0)),
                    _weight_spec((E_pad, th), lambda i, h: (0, h), nbuf),
                    _weight_spec((E_pad, th), lambda i, h: (0, h), nbuf),
                    _weight_spec((th, E_pad), lambda i, h: (h, 0), nbuf),
                ],
                out_specs=pl.BlockSpec((tm, E_pad), lambda i, h: (i, 0)),
                scratch_shapes=[pltpu.VMEM((tm, E_pad), jnp.float32)],
            ),
            compiler_params=pltpu.CompilerParams(
                dimension_semantics=("parallel", "arbitrary"),
                vmem_limit_bytes=vmem_limit,
            ),
            cost_estimate=cost,
        )(x2d, w1p, w2p, w3p)

    # TODO(synk): v7x decode with n_t == 1 leaves one TensorCore idle; splitting
    # the hidden (or output-E) axis across the two cores would recover it.
    if deep_weights:
        try:
            out2d = _run(3)
        except Exception:  # deeper buffering rejected -> default double-buffering
            out2d = _run(2)
    else:
        out2d = _run(2)

    if T_pad != T or E_pad != E:
        out2d = out2d[:T, :E]
    return out2d.reshape(B, S, E)


if __name__ == "__main__":
    def ref_ffn(x, w1, w2, w3):
        xf = x.astype(jnp.float32)
        h1 = xf @ w1.astype(jnp.float32)
        h2 = xf @ w2.astype(jnp.float32)
        return (jax.nn.silu(h1) * h2) @ w3.astype(jnp.float32)

    key = jax.random.PRNGKey(0)

    def make_inputs(key, batch, seq, emb_dim, hidden_dim, dtype):
        kx, k1, k2, k3, key = jax.random.split(key, 5)
        x = jax.random.normal(kx, (batch, seq, emb_dim), dtype=jnp.float32)
        # nn.Linear(in, out) weight has shape (out, in); store the transpose.
        w1 = (jax.random.normal(k1, (hidden_dim, emb_dim)) * 0.02).T
        w2 = (jax.random.normal(k2, (hidden_dim, emb_dim)) * 0.02).T
        w3 = (jax.random.normal(k3, (emb_dim, hidden_dim)) * 0.02).T
        return (x.astype(dtype), w1.astype(dtype), w2.astype(dtype),
                w3.astype(dtype), key)

    # Test 1: small Qwen3-style config, f32, pads E 64 -> 128, single hidden tile.
    x, w1, w2, w3, key = make_inputs(key, 2, 8, 64, 128, jnp.float32)
    out = jax.block_until_ready(feed_forward(x, w1, w2, w3))
    ref = ref_ffn(x, w1, w2, w3)
    assert out.shape == (2, 8, 64)
    assert jnp.allclose(out, ref, atol=1e-4, rtol=1e-4)

    # Test 2: non-128-aligned dims + multiple hidden tiles (exercises padding,
    # the f32 accumulator across h steps, and the deep-buffered weight streams).
    x, w1, w2, w3, key = make_inputs(key, 2, 5, 96, 384, jnp.float32)
    out = jax.block_until_ready(feed_forward(x, w1, w2, w3, th=128))
    ref = ref_ffn(x, w1, w2, w3)
    assert out.shape == (2, 5, 96)
    assert jnp.allclose(out, ref, atol=1e-4, rtol=1e-4)

    # Test 3: bf16, fully 128-aligned dims (no padding path), two hidden tiles.
    x, w1, w2, w3, key = make_inputs(key, 2, 16, 128, 256, jnp.bfloat16)
    out = jax.block_until_ready(feed_forward(x, w1, w2, w3, th=128))
    ref = ref_ffn(x, w1, w2, w3)
    assert out.shape == (2, 16, 128)
    assert jnp.allclose(out.astype(jnp.float32), ref, atol=2e-2, rtol=2e-2)

    print("KERNEL_OK")
</pallas_src>

<mosaic_0001>
module attributes {stable_mosaic.version = 11 : i64} {
  func.func @_ffn_kernel(%arg0: i32, %arg1: i32, %arg2: memref<16x128xf32, #tpu.memory_space<vmem>>, %arg3: memref<128x128xf32, #tpu.memory_space<vmem>>, %arg4: memref<128x128xf32, #tpu.memory_space<vmem>>, %arg5: memref<128x128xf32, #tpu.memory_space<vmem>>, %arg6: memref<16x128xf32, #tpu.memory_space<vmem>>, %arg7: memref<16x128xf32, #tpu.memory_space<vmem>>) attributes {dimension_semantics = [#tpu.dimension_semantics<parallel>, #tpu.dimension_semantics<arbitrary>], iteration_bounds = array<i64: 1, 1>, scalar_prefetch = 0 : i64, scratch_operands = 1 : i64, tpu.core_type = #tpu.core_type<tc>, window_params = [{transform_indices = @transform_0, window_bounds = array<i64: 16, 128>}, {transform_indices = @transform_1, window_bounds = array<i64: 128, 128>}, {transform_indices = @transform_2, window_bounds = array<i64: 128, 128>}, {transform_indices = @transform_3, window_bounds = array<i64: 128, 128>}, {transform_indices = @transform_4, window_bounds = array<i64: 16, 128>}]} {
    %c0_i32 = arith.constant 0 : i32
    %0 = arith.cmpi eq, %arg1, %c0_i32 : i32
    %1 = arith.extui %0 : i1 to i32
    %c0_i32_0 = arith.constant 0 : i32
    %2 = arith.cmpi ne, %1, %c0_i32_0 : i32
    scf.if %2 {
      %cst_17 = arith.constant 0.000000e+00 : f32
      %23 = vector.broadcast %cst_17 : f32 to vector<16x128xf32>
      %c0_18 = arith.constant 0 : index
      %c0_19 = arith.constant 0 : index
      %24 = vector.load %arg7[%c0_18, %c0_19] : memref<16x128xf32, #tpu.memory_space<vmem>>, vector<16x128xf32>
      tpu.vector_store %arg7[%c0_18, %c0_19], %23 {strides = array<i32>} : memref<16x128xf32, #tpu.memory_space<vmem>>, vector<16x128xf32>,
    } else {
    }
    %c0 = arith.constant 0 : index
    %c0_1 = arith.constant 0 : index
    %3 = vector.load %arg2[%c0, %c0_1] : memref<16x128xf32, #tpu.memory_space<vmem>>, vector<16x128xf32>
    %c0_2 = arith.constant 0 : index
    %c0_3 = arith.constant 0 : index
    %4 = vector.load %arg3[%c0_2, %c0_3] : memref<128x128xf32, #tpu.memory_space<vmem>>, vector<128x128xf32>
    %cst = arith.constant dense<0.000000e+00> : vector<16x128xf32>
    %5 = tpu.matmul %3, %4, %cst {dimension_numbers = #tpu.dot_dimension_numbers<[1], [0], [0], [1], [0, 0, 1, 1], [], []>} : vector<16x128xf32>, vector<128x128xf32>, vector<16x128xf32> -> vector<16x128xf32>
    %c0_4 = arith.constant 0 : index
    %c0_5 = arith.constant 0 : index
    %6 = vector.load %arg4[%c0_4, %c0_5] : memref<128x128xf32, #tpu.memory_space<vmem>>, vector<128x128xf32>
    %cst_6 = arith.constant dense<0.000000e+00> : vector<16x128xf32>
    %7 = tpu.matmul %3, %6, %cst_6 {dimension_numbers = #tpu.dot_dimension_numbers<[1], [0], [0], [1], [0, 0, 1, 1], [], []>} : vector<16x128xf32>, vector<128x128xf32>, vector<16x128xf32> -> vector<16x128xf32>
    %8 = arith.negf %5 : vector<16x128xf32>
    %9 = math.exp %8 : vector<16x128xf32>
    %cst_7 = arith.constant 1.000000e+00 : f32
    %10 = vector.broadcast %cst_7 : f32 to vector<16x128xf32>
    %11 = arith.addf %10, %9 : vector<16x128xf32>
    %12 = arith.divf %10, %11 : vector<16x128xf32>
    %13 = arith.mulf %5, %12 : vector<16x128xf32>
    %14 = arith.mulf %13, %7 : vector<16x128xf32>
    %c0_8 = arith.constant 0 : index
    %c0_9 = arith.constant 0 : index
    %15 = vector.load %arg7[%c0_8, %c0_9] : memref<16x128xf32, #tpu.memory_space<vmem>>, vector<16x128xf32>
    %c0_10 = arith.constant 0 : index
    %c0_11 = arith.constant 0 : index
    %16 = vector.load %arg5[%c0_10, %c0_11] : memref<128x128xf32, #tpu.memory_space<vmem>>, vector<128x128xf32>
    %cst_12 = arith.constant dense<0.000000e+00> : vector<16x128xf32>
    %17 = tpu.matmul %14, %16, %cst_12 {dimension_numbers = #tpu.dot_dimension_numbers<[1], [0], [0], [1], [0, 0, 1, 1], [], []>} : vector<16x128xf32>, vector<128x128xf32>, vector<16x128xf32> -> vector<16x128xf32>
    %18 = arith.addf %15, %17 : vector<16x128xf32>
    %c0_13 = arith.constant 0 : index
    %c0_14 = arith.constant 0 : index
    %19 = vector.load %arg7[%c0_13, %c0_14] : memref<16x128xf32, #tpu.memory_space<vmem>>, vector<16x128xf32>
    tpu.vector_store %arg7[%c0_13, %c0_14], %18 {strides = array<i32>} : memref<16x128xf32, #tpu.memory_space<vmem>>, vector<16x128xf32>,
    %c0_i32_15 = arith.constant 0 : i32
    %20 = arith.cmpi eq, %arg1, %c0_i32_15 : i32
    %21 = arith.extui %20 : i1 to i32
    %c0_i32_16 = arith.constant 0 : i32
    %22 = arith.cmpi ne, %21, %c0_i32_16 : i32
    scf.if %22 {
      %c0_17 = arith.constant 0 : index
      %c0_18 = arith.constant 0 : index
      %23 = vector.load %arg7[%c0_17, %c0_18] : memref<16x128xf32, #tpu.memory_space<vmem>>, vector<16x128xf32>
      %c0_19 = arith.constant 0 : index
      %c0_20 = arith.constant 0 : index
      %24 = vector.load %arg6[%c0_19, %c0_20] : memref<16x128xf32, #tpu.memory_space<vmem>>, vector<16x128xf32>
      tpu.vector_store %arg6[%c0_19, %c0_20], %23 {strides = array<i32>} : memref<16x128xf32, #tpu.memory_space<vmem>>, vector<16x128xf32>,
    } else {
    }
    return
  }
  func.func @transform_0(%arg0: i32, %arg1: i32) -> (i32, i32) {
    %c0_i32 = arith.constant 0 : i32
    %c0_i32_0 = arith.constant 0 : i32
    return %arg0, %c0_i32 : i32, i32
  }
  func.func @transform_1(%arg0: i32, %arg1: i32) -> (i32, i32) {
    %c0_i32 = arith.constant 0 : i32
    %c0_i32_0 = arith.constant 0 : i32
    return %c0_i32, %arg1 : i32, i32
  }
  func.func @transform_2(%arg0: i32, %arg1: i32) -> (i32, i32) {
    %c0_i32 = arith.constant 0 : i32
    %c0_i32_0 = arith.constant 0 : i32
    return %c0_i32, %arg1 : i32, i32
  }
  func.func @transform_3(%arg0: i32, %arg1: i32) -> (i32, i32) {
    %c0_i32 = arith.constant 0 : i32
    %c0_i32_0 = arith.constant 0 : i32
    return %arg1, %c0_i32 : i32, i32
  }
  func.func @transform_4(%arg0: i32, %arg1: i32) -> (i32, i32) {
    %c0_i32 = arith.constant 0 : i32
    %c0_i32_0 = arith.constant 0 : i32
    return %arg0, %c0_i32 : i32, i32
  }
}

</mosaic_0001>

<bundles_post_ra>
// kernel: tpu_custom_call.1
= control target key start
LH: loop header
LB: loop body
LE: loop exit
PB: predicated region body
PF: predicated region fallthrough
CT: control target
= control target key end

     0   :  { %9 = vsyncpa [#allocation4], 0  ;;  %s752_s0 = inlined_call_operand.hbm [shape: f32[16,128], index: 0, kind: input, shape index: {}]   ;;  %s753_s1 = inlined_call_operand.hbm [shape: f32[128,128], index: 1, kind: input, shape index: {}]   ;;  %s754_s2 = inlined_call_operand.hbm [shape: f32[128,128], index: 2, kind: input, shape index: {}]   ;;  %s755_s3 = inlined_call_operand.hbm [shape: f32[128,128], index: 3, kind: input, shape index: {}]   ;;  %s756_s4 = inlined_call_operand.hbm [shape: f32[16,128], index: 4, kind: output, shape index: {}]  }
   0x1   :  { %10 = vsyncpa [#allocation7], 0 }
   0x2   :  { %11 = vsyncpa [#allocation10], 0 }
   0x3   :  { %12 = vsyncpa [#allocation5], 0  ;;  %s686_s15 = smov [#allocation6]   ;;  %s687_s17 = smov [#allocation3]  }
   0x4   :  { %s30_s16 = sshll.u32 %s686_s15, 4  ;;  %s18_s18 = sshll.u32 %s687_s17, 4  ;;  %s31_s16 = int_to_ptr.vmem [resolvable:$true] %s30_s16  ;;  %s19_s18 = int_to_ptr.vmem [resolvable:$true] %s18_s18 }
   0x5   :  { %s586_s19 = scalar_lea.vmem %s31_s16, 2048  ;;  %p591_p1 = scmp.lt.s32.totalorder %s31_s16, %s31_s16 }
   0x6   :  { %p587_p0 = scmp.ne.s32.totalorder %s31_s16, %s586_s19  ;;  %p592_p2 = scmp.lt.s32.totalorder %s586_s19, %s586_s19 }
   0x8   :  { %p593_p3 = por %p592_p2, %p591_p1 }
   0xa   :  { %p594_p4 = pnand %p593_p3, %p587_p0 }
   0xc   :  { %597 = shalt.err (!%p594_p4)
}
   0xd   :  { %s688_s20 = smov 128   ;;  %s689_s21 = smov 8  }
   0xe   :  { %36 = dma.hbm_to_vmem [thread:$0]  %s753_s1, 2048, %s31_s16, [#allocation7], %s688_s20, %s688_s20, %s689_s21  }
   0xf   :  { %s606_s24 = scalar_lea.vmem %s19_s18, 256  ;;  %p611_p6 = scmp.lt.s32.totalorder %s19_s18, %s19_s18 }
  0x10   :  { %p607_p5 = scmp.ne.s32.totalorder %s19_s18, %s606_s24  ;;  %p612_p7 = scmp.lt.s32.totalorder %s606_s24, %s606_s24 }
  0x12   :  { %p613_p8 = por %p612_p7, %p611_p6 }
  0x14   :  { %p614_p9 = pnand %p613_p8, %p607_p5 }
  0x16   :  { %617 = shalt.err (!%p614_p9)
}
  0x17   :  { %24 = dma.hbm_to_vmem [thread:$0]  %s752_s0, 256, %s19_s18, [#allocation4], %s688_s20, %s688_s20, %s689_s21  }
  0x18   :  { %s690_s27 = smov [#allocation8]   ;;  %s691_s29 = smov [#allocation9]  }
  0x19   :  { %s42_s28 = sshll.u32 %s690_s27, 4  ;;  %s54_s30 = sshll.u32 %s691_s29, 4  ;;  %s43_s28 = int_to_ptr.vmem [resolvable:$true] %s42_s28  ;;  %s55_s30 = int_to_ptr.vmem [resolvable:$true] %s54_s30 }
  0x1a   :  { %s626_s1 = scalar_lea.vmem %s43_s28, 2048  ;;  %p631_p11 = scmp.lt.s32.totalorder %s43_s28, %s43_s28 }
  0x1b   :  { %p627_p10 = scmp.ne.s32.totalorder %s43_s28, %s626_s1  ;;  %p632_p12 = scmp.lt.s32.totalorder %s626_s1, %s626_s1 }
  0x1d   :  { %p633_p13 = por %p632_p12, %p631_p11 }
  0x1f   :  { %p634_p0 = pnand %p633_p13, %p627_p10 }
  0x21   :  { %637 = shalt.err (!%p634_p0)
}
  0x22   :  { %48 = dma.hbm_to_vmem [thread:$0]  %s754_s2, 2048, %s43_s28, [#allocation7], %s688_s20, %s688_s20, %s689_s21  }
  0x23   :  { %s646_s0 = scalar_lea.vmem %s55_s30, 2048  ;;  %p651_p2 = scmp.lt.s32.totalorder %s55_s30, %s55_s30 }
  0x24   :  { %p647_p1 = scmp.ne.s32.totalorder %s55_s30, %s646_s0  ;;  %p652_p3 = scmp.lt.s32.totalorder %s646_s0, %s646_s0 }
  0x26   :  { %p653_p4 = por %p652_p3, %p651_p2 }
  0x28   :  { %p654_p5 = pnand %p653_p4, %p647_p1 }
  0x2a   :  { %657 = shalt.err (!%p654_p5)
}
  0x2b   :  { %60 = dma.hbm_to_vmem [thread:$0]  %s755_s3, 2048, %s55_s30, [#allocation10], %s688_s20, %s688_s20, %s689_s21  }
  0x2c   :  { %678 = dma.done.wait [#allocation4], 256  }
  0x2d   :  { %679 = vsyncadd [#allocation4], 4294967040 }
  0x2e   :  { %680 = dma.done.wait [#allocation7], 4096  }
  0x2f   :  { %681 = vsyncadd [#allocation7], 4294963200 }
  0x30   :  { %682 = dma.done.wait [#allocation10], 2048  }
  0x31   :  { %683 = vsyncadd [#allocation10], 4294965248  ;;  %v96_v0 = vld [vmem:[#allocation6 + $0x78] sm:$0xff]  ;;  %v95_v1 = vld [vmem:[#allocation6 + $0x70] sm:$0xff]  ;;  %s692_s2 = smov [#allocation11]  }
  0x32   :  { %458 = vmatprep.subr.mxu0 %v96_v0  ;;  %v94_v2 = vld [vmem:[#allocation6 + $0x68] sm:$0xff]  ;;  %v93_v3 = vld [vmem:[#allocation6 + $0x60] sm:$0xff]  ;;  %v742_v4 = vld [vmem:[#allocation3] sm:$0xff]  ;;  %s388_s3 = sshll.u32 %s692_s2, 4  ;;  %s389_s3 = int_to_ptr.vmem [resolvable:$true] %s388_s3 }
  0x33   :  { %459 = vmatpush3.msra.mxu0 %v96_v0  ;;  %v92_v5 = vld [vmem:[#allocation6 + $0x58] sm:$0xff]  ;;  %490 = vmatprep.mubr.f32.mxu0 %v742_v4  ;;  %v186_v7 = vld [vmem:[#allocation8 + $0x70] sm:$0xff]  ;;  %v185_v9 = vld [vmem:[#allocation8 + $0x68] sm:$0xff]  ;;  %s658_s9 = scalar_lea.vmem %s389_s3, 256  ;;  %p663_p7 = scmp.lt.s32.totalorder %s389_s3, %s389_s3 }
  0x34   :  { %460 = vmatprep.subr.mxu0 %v95_v1  ;;  %v187_v6 = vld [vmem:[#allocation8 + $0x78] sm:$0xff]  ;;  %v91_v8 = vld [vmem:[#allocation6 + $0x50] sm:$0xff]  ;;  %v90_v10 = vld [vmem:[#allocation6 + $0x48] sm:$0xff]  ;;  %525 = vmatprep.mubr.f32.mxu1 %v742_v4  ;;  %p659_p6 = scmp.ne.s32.totalorder %s389_s3, %s658_s9  ;;  %p664_p8 = scmp.lt.s32.totalorder %s658_s9, %s658_s9 }
  0x35   :  { %461 = vmatpush3.msra.mxu0 %v95_v1  ;;  %493 = vmatprep.subr.mxu1 %v187_v6  ;;  %v184_v11 = vld [vmem:[#allocation8 + $0x60] sm:$0xff]  ;;  %v183_v13 = vld [vmem:[#allocation8 + $0x58] sm:$0xff]  ;;  %v182_v15 = vld [vmem:[#allocation8 + $0x50] sm:$0xff] }
  0x36   :  { %462 = vmatprep.subr.mxu0 %v94_v2  ;;  %494 = vmatpush3.msra.mxu1 %v187_v6  ;;  %v89_v12 = vld [vmem:[#allocation6 + $0x40] sm:$0xff]  ;;  %v88_v14 = vld [vmem:[#allocation6 + $0x38] sm:$0xff]  ;;  %v87_v16 = vld [vmem:[#allocation6 + $0x30] sm:$0xff]  ;;  %p665_p9 = por %p664_p8, %p663_p7 }
  0x37   :  { %463 = vmatpush3.msra.mxu0 %v94_v2  ;;  %495 = vmatprep.subr.mxu1 %v186_v7  ;;  %v181_v17 = vld [vmem:[#allocation8 + $0x48] sm:$0xff]  ;;  %v180_v19 = vld [vmem:[#allocation8 + $0x40] sm:$0xff]  ;;  %v179_v21 = vld [vmem:[#allocation8 + $0x38] sm:$0xff] }
  0x38   :  { %464 = vmatprep.subr.mxu0 %v93_v3  ;;  %496 = vmatpush3.msra.mxu1 %v186_v7  ;;  %v86_v18 = vld [vmem:[#allocation6 + $0x28] sm:$0xff]  ;;  %v85_v20 = vld [vmem:[#allocation6 + $0x20] sm:$0xff]  ;;  %v84_v22 = vld [vmem:[#allocation6 + $0x18] sm:$0xff]  ;;  %p666_p10 = pnand %p665_p9, %p659_p6 }
  0x39   :  { %465 = vmatpush3.msra.mxu0 %v93_v3  ;;  %497 = vmatprep.subr.mxu1 %v185_v9  ;;  %v178_v23 = vld [vmem:[#allocation8 + $0x30] sm:$0xff]  ;;  %v177_v25 = vld [vmem:[#allocation8 + $0x28] sm:$0xff]  ;;  %v176_v27 = vld [vmem:[#allocation8 + $0x20] sm:$0xff] }
  0x3a   :  { %466 = vmatprep.subr.mxu0 %v92_v5  ;;  %498 = vmatpush3.msra.mxu1 %v185_v9  ;;  %v83_v24 = vld [vmem:[#allocation6 + $0x10] sm:$0xff]  ;;  %v82_v26 = vld [vmem:[#allocation6 + $0x8] sm:$0xff]  ;;  %v81_v28 = vld [vmem:[#allocation6] sm:$0xff] }
  0x3b   :  { %467 = vmatpush3.msra.mxu0 %v92_v5  ;;  %499 = vmatprep.subr.mxu1 %v184_v11  ;;  %v175_v29 = vld [vmem:[#allocation8 + $0x18] sm:$0xff]  ;;  %v174_v31 = vld [vmem:[#allocation8 + $0x10] sm:$0xff]  ;;  %v173_v32 = vld [vmem:[#allocation8 + $0x8] sm:$0xff] }
  0x3c   :  { %468 = vmatprep.subr.mxu0 %v91_v8  ;;  %500 = vmatpush3.msra.mxu1 %v184_v11  ;;  %v80_v30 = vld [vmem:[#allocation3 + $0x8] sm:$0xff]  ;;  %v172_v33 = vld [vmem:[#allocation8] sm:$0xff]  ;;  %v295_v35 = vld [vmem:[#allocation9 + $0x70] sm:$0xff] }
  0x3d   :  { %469 = vmatpush3.msra.mxu0 %v91_v8  ;;  %501 = vmatprep.subr.mxu1 %v183_v13  ;;  %v296_v34 = vld [vmem:[#allocation9 + $0x78] sm:$0xff]  ;;  %v294_v36 = vld [vmem:[#allocation9 + $0x68] sm:$0xff]  ;;  %v293_v37 = vld [vmem:[#allocation9 + $0x60] sm:$0xff] }
  0x3e   :  { %470 = vmatprep.subr.mxu0 %v90_v10  ;;  %502 = vmatpush3.msra.mxu1 %v183_v13  ;;  %v292_v38 = vld [vmem:[#allocation9 + $0x58] sm:$0xff]  ;;  %v291_v39 = vld [vmem:[#allocation9 + $0x50] sm:$0xff]  ;;  %v290_v40 = vld [vmem:[#allocation9 + $0x48] sm:$0xff] }
  0x3f   :  { %471 = vmatpush3.msra.mxu0 %v90_v10  ;;  %503 = vmatprep.subr.mxu1 %v182_v15  ;;  %v289_v41 = vld [vmem:[#allocation9 + $0x40] sm:$0xff]  ;;  %v288_v42 = vld [vmem:[#allocation9 + $0x38] sm:$0xff]  ;;  %v287_v43 = vld [vmem:[#allocation9 + $0x30] sm:$0xff] }
  0x40   :  { %472 = vmatprep.subr.mxu0 %v89_v12  ;;  %504 = vmatpush3.msra.mxu1 %v182_v15  ;;  %v286_v44 = vld [vmem:[#allocation9 + $0x28] sm:$0xff]  ;;  %v285_v45 = vld [vmem:[#allocation9 + $0x20] sm:$0xff]  ;;  %v284_v46 = vld [vmem:[#allocation9 + $0x18] sm:$0xff] }
  0x41   :  { %473 = vmatpush3.msra.mxu0 %v89_v12  ;;  %505 = vmatprep.subr.mxu1 %v181_v17  ;;  %v283_v47 = vld [vmem:[#allocation9 + $0x10] sm:$0xff]  ;;  %v282_v48 = vld [vmem:[#allocation9 + $0x8] sm:$0xff]  ;;  %v281_v49 = vld [vmem:[#allocation9] sm:$0xff] }
  0x42   :  { %474 = vmatprep.subr.mxu0 %v88_v14  ;;  %506 = vmatpush3.msra.mxu1 %v181_v17 }
  0x43   :  { %475 = vmatpush3.msra.mxu0 %v88_v14  ;;  %507 = vmatprep.subr.mxu1 %v180_v19 }
  0x44   :  { %476 = vmatprep.subr.mxu0 %v87_v16  ;;  %508 = vmatpush3.msra.mxu1 %v180_v19 }
  0x45   :  { %477 = vmatpush3.msra.mxu0 %v87_v16  ;;  %509 = vmatprep.subr.mxu1 %v179_v21 }
  0x46   :  { %478 = vmatprep.subr.mxu0 %v86_v18  ;;  %510 = vmatpush3.msra.mxu1 %v179_v21 }
  0x47   :  { %479 = vmatpush3.msra.mxu0 %v86_v18  ;;  %511 = vmatprep.subr.mxu1 %v178_v23 }
  0x48   :  { %480 = vmatprep.subr.mxu0 %v85_v20  ;;  %512 = vmatpush3.msra.mxu1 %v178_v23 }
  0x49   :  { %481 = vmatpush3.msra.mxu0 %v85_v20  ;;  %513 = vmatprep.subr.mxu1 %v177_v25 }
  0x4a   :  { %482 = vmatprep.subr.mxu0 %v84_v22  ;;  %514 = vmatpush3.msra.mxu1 %v177_v25 }
  0x4b   :  { %483 = vmatpush3.msra.mxu0 %v84_v22  ;;  %515 = vmatprep.subr.mxu1 %v176_v27 }
  0x4c   :  { %484 = vmatprep.subr.mxu0 %v83_v24  ;;  %516 = vmatpush3.msra.mxu1 %v176_v27 }
  0x4d   :  { %485 = vmatpush3.msra.mxu0 %v83_v24  ;;  %517 = vmatprep.subr.mxu1 %v175_v29 }
  0x4e   :  { %486 = vmatprep.subr.mxu0 %v82_v26  ;;  %518 = vmatpush3.msra.mxu1 %v175_v29 }
  0x4f   :  { %487 = vmatpush3.msra.mxu0 %v82_v26  ;;  %519 = vmatprep.subr.mxu1 %v174_v31 }
  0x50   :  { %488 = vmatprep.subr.mxu0 %v81_v28  ;;  %520 = vmatpush3.msra.mxu1 %v174_v31 }
  0x51   :  { %489 = vmatpush3.msra.mxu0 %v81_v28  ;;  %521 = vmatprep.subr.mxu1 %v173_v32 }
  0x52   :  { %491 = vmatmul.mubr.f32.vlgmr.msra.gmra.mxu0 %v80_v30  ;;  %522 = vmatpush3.msra.mxu1 %v173_v32 }
  0x53   :  { %523 = vmatprep.subr.mxu1 %v172_v33  ;;  %528 = vmatprep.subr.mxu0 %v296_v34 }
  0x54   :  { %524 = vmatpush3.msra.mxu1 %v172_v33  ;;  %529 = vmatpush3.msra.mxu0 %v296_v34 }
  0x55   :  { %526 = vmatmul.mubr.f32.vlgmr.msra.gmra.mxu1 %v80_v30  ;;  %530 = vmatprep.subr.mxu0 %v295_v35 }
  0x56   :  { %531 = vmatpush3.msra.mxu0 %v295_v35 }
  0x57   :  { %532 = vmatprep.subr.mxu0 %v294_v36 }
  0x58   :  { %533 = vmatpush3.msra.mxu0 %v294_v36 }
  0x59   :  { %534 = vmatprep.subr.mxu0 %v293_v37 }
  0x5a   :  { %535 = vmatpush3.msra.mxu0 %v293_v37 }
  0x5b   :  { %536 = vmatprep.subr.mxu0 %v292_v38 }
  0x5c   :  { %537 = vmatpush3.msra.mxu0 %v292_v38 }
  0x5d   :  { %538 = vmatprep.subr.mxu0 %v291_v39 }
  0x5e   :  { %539 = vmatpush3.msra.mxu0 %v291_v39 }
  0x5f   :  { %540 = vmatprep.subr.mxu0 %v290_v40 }
  0x60   :  { %541 = vmatpush3.msra.mxu0 %v290_v40 }
  0x61   :  { %542 = vmatprep.subr.mxu0 %v289_v41 }
  0x62   :  { %543 = vmatpush3.msra.mxu0 %v289_v41 }
  0x63   :  { %544 = vmatprep.subr.mxu0 %v288_v42 }
  0x64   :  { %545 = vmatpush3.msra.mxu0 %v288_v42 }
  0x65   :  { %546 = vmatprep.subr.mxu0 %v287_v43 }
  0x66   :  { %547 = vmatpush3.msra.mxu0 %v287_v43 }
  0x67   :  { %548 = vmatprep.subr.mxu0 %v286_v44 }
  0x68   :  { %549 = vmatpush3.msra.mxu0 %v286_v44 }
  0x69   :  { %550 = vmatprep.subr.mxu0 %v285_v45 }
  0x6a   :  { %551 = vmatpush3.msra.mxu0 %v285_v45 }
  0x6b   :  { %552 = vmatprep.subr.mxu0 %v284_v46 }
  0x6c   :  { %553 = vmatpush3.msra.mxu0 %v284_v46 }
  0x6d   :  { %554 = vmatprep.subr.mxu0 %v283_v47 }
  0x6e   :  { %555 = vmatpush3.msra.mxu0 %v283_v47 }
  0x6f   :  { %556 = vmatprep.subr.mxu0 %v282_v48 }
  0x70   :  { %557 = vmatpush3.msra.mxu0 %v282_v48 }
  0x71   :  { %558 = vmatprep.subr.mxu0 %v281_v49 }
  0x72   :  { %559 = vmatpush3.msra.mxu0 %v281_v49 }
 0x112   :  { %v492_v50 = vpop.f32.mrf.mxu0 }
 0x113   :  { %v403_v51 = vmul.f32 -1.442695, %v492_v50 }
 0x114   :  { %v163_v52 = vpop.f32.mrf.mxu0 }
 0x115   :  { %570 = vpow2.f32 %v403_v51  ;;  %v402_v53 = vmul.f32 -1.442695, %v163_v52  ;;  %v527_v59 = vpop.f32.mrf.mxu1 }
 0x117   :  { %572 = vpow2.f32 %v402_v53  ;;  %v254_v63 = vpop.f32.mrf.mxu1 }
 0x122   :  { %v571_v54 = vpop.eup %570 }
 0x123   :  { %v270_v55 = vadd.f32 1.0, %v571_v54 }
 0x124   :  { %v573_v56 = vpop.eup %572 }
 0x125   :  { %574 = vrcp.f32 %v270_v55  ;;  %v269_v57 = vadd.f32 1.0, %v573_v56 }
 0x127   :  { %576 = vrcp.f32 %v269_v57 }
 0x132   :  { %v575_v58 = vpop.eup %574 }
 0x133   :  { %v276_v61 = vmul.f32 %v575_v58, %v492_v50 }
 0x134   :  { %v577_v60 = vpop.eup %576 }
 0x135   :  { %v275_v62 = vmul.f32 %v577_v60, %v163_v52  ;;  %v278_v1 = vmul.f32 %v527_v59, %v276_v61 }
 0x137   :  { %v277_v0 = vmul.f32 %v275_v62, %v254_v63 }
 0x139   :  { %560 = vmatprep.mubr.f32.mxu0 %v277_v0 }
 0x13a   :  { %561 = vmatmul.mubr.f32.vlgmr.msra.gmra.mxu0 %v278_v1 }
 0x1fa   :  { %v562_v2 = vpop.f32.mrf.mxu0 }
 0x1fb   :  { %382 = vst [vmem:[#allocation11 + $0x8] sm:$0xff] %v562_v2 }
 0x1fc   :  { %v363_v3 = vpop.f32.mrf.mxu0 }
 0x1fd   :  { %381 = vst [vmem:[#allocation11] sm:$0xff] %v363_v3 }
 0x1fe   :  { %669 = shalt.err (!%p666_p10)
}
 0x1ff   :  { %394 = dma.vmem_to_hbm [thread:$0]  %s389_s3, 256, %s756_s4, [#allocation5], %s688_s20, %s688_s20, %s689_s21  }
 0x200   :  { %684 = dma.done.wait [#allocation5], 256  }
 0x201   :  { %685 = vsyncadd [#allocation5], 4294967040 }
 0x202   :  { %398 = vsyncpa [#allocation4], 1 }
 0x203   :  { %399 = vsyncpa [#allocation7], 1 }
 0x204   :  { %400 = vsyncpa [#allocation10], 1 }
 0x205   :  { %401 = vsyncpa [#allocation5], 1 }

</bundles_post_ra>
